<compile_context>
chip_gen: v7x
topology: tpu7x:2x2x1
jax: 0.10.0
libtpu: 0.0.40
codegen_flags: <defaults>
</compile_context>

<pallas_src>
import jax
import jax.numpy as jnp
from jax.experimental import pallas as pl
from jax.experimental.pallas import tpu as pltpu


IN_FEATURES = 3
H1 = 64
H2 = 32
NUM_CLASSES = 5

IN_PAD = 8             # layer-1 contracting dim padded 3 -> 8 (zero cols) for a clean MXU push
MAX_BATCH_TILE = 2048  # multiple of 256; double-buffered in/out tiles ~4 MiB << 16 MiB (v5e scoped)


def _round_up(n, m):
    return m * pl.cdiv(n, m)


def _mlp_kernel(x_ref, w1_ref, b1_ref, w2_ref, b2_ref, w3_ref, b3_ref, o_ref):
    # Whole MLP fused per batch tile. All three GEMMs on the MXU with f32
    # accumulation; bias-add + ReLU on the VPU.
    x = x_ref[...]                                            # (Bt, 8), cols 3..7 are zero

    h1 = jnp.dot(x, w1_ref[...], preferred_element_type=jnp.float32)
    h1 = jnp.maximum(h1 + b1_ref[...], 0.0)                   # (Bt, 64)

    h2 = jnp.dot(h1, w2_ref[...], preferred_element_type=jnp.float32)
    h2 = jnp.maximum(h2 + b2_ref[...], 0.0)                   # (Bt, 32)

    out = jnp.dot(h2, w3_ref[...], preferred_element_type=jnp.float32)
    o_ref[...] = (out + b3_ref[...]).astype(o_ref.dtype)      # (Bt, 5) narrow store


@jax.jit
def object_classification_forward(x, kernel_params):
    """x: (B, 3) float32; kernel_params from prepare_params(); returns (B, 5) logits."""
    w1, b1, w2, b2, w3, b3 = kernel_params
    B = x.shape[0]

    # Batch tile: large enough to amortize per-grid-step overhead, no larger
    # than needed for small batches (keeps >=2 grid steps once B >= 2*tile,
    # so v7x's two TensorCores both get work on real batch sizes).
    bt = min(MAX_BATCH_TILE, _round_up(B, 256))
    padded_b = _round_up(B, bt)

    # Pad batch rows (garbage rows sliced off below) and features 3 -> 8 so
    # layer 1's MXU contraction is clean; both pads fuse under jit.
    x = jnp.pad(x, ((0, padded_b - B), (0, IN_PAD - IN_FEATURES)))

    grid = (padded_b // bt,)

    def batch_map(i):
        return (i, 0)

    def const_map(i):
        return (0, 0)

    out = pl.pallas_call(
        _mlp_kernel,
        out_shape=jax.ShapeDtypeStruct((padded_b, NUM_CLASSES), jnp.float32),
        grid=grid,
        in_specs=[
            pl.BlockSpec((bt, IN_PAD), batch_map),
            # Weights/biases: constant index maps -> resident tiles (~40 KB total).
            pl.BlockSpec((IN_PAD, H1), const_map),
            pl.BlockSpec((1, H1), const_map),
            pl.BlockSpec((H1, H2), const_map),
            pl.BlockSpec((1, H2), const_map),
            pl.BlockSpec((H2, NUM_CLASSES), const_map),
            pl.BlockSpec((1, NUM_CLASSES), const_map),
        ],
        out_specs=pl.BlockSpec((bt, NUM_CLASSES), batch_map),
        compiler_params=pltpu.CompilerParams(
            dimension_semantics=("parallel",)),
    )(x, w1, b1, w2, b2, w3, b3)

    # Only the batch padding needs stripping; the logits width is already 5.
    return out[:B]


def init_params(key):
    """Deterministic init mimicking nn.Linear's uniform(-1/sqrt(fan_in), 1/sqrt(fan_in)).

    Weights stored pre-transposed as (in_features, out_features) == PyTorch weight.T.
    """
    ks = jax.random.split(key, 6)

    def linear(kw, kb, fan_in, fan_out):
        bound = 1.0 / jnp.sqrt(fan_in)
        w = jax.random.uniform(kw, (fan_in, fan_out), jnp.float32, -bound, bound)
        b = jax.random.uniform(kb, (1, fan_out), jnp.float32, -bound, bound)
        return w, b

    w1, b1 = linear(ks[0], ks[1], IN_FEATURES, H1)
    w2, b2 = linear(ks[2], ks[3], H1, H2)
    w3, b3 = linear(ks[4], ks[5], H2, NUM_CLASSES)
    return (w1, b1, w2, b2, w3, b3)


def prepare_params(raw_params):
    """One-time, out-of-forward-path weight prep: pad layer-1 K from 3 to 8."""
    w1, b1, w2, b2, w3, b3 = raw_params
    w1p = jnp.pad(w1, ((0, IN_PAD - IN_FEATURES), (0, 0)))   # zero rows -> exact same result
    return (w1p, b1, w2, b2, w3, b3)


def reference_forward(x, raw_params):
    w1, b1, w2, b2, w3, b3 = raw_params
    hp = jax.lax.Precision.HIGHEST
    h1 = jnp.maximum(jnp.dot(x, w1, precision=hp) + b1, 0.0)
    h2 = jnp.maximum(jnp.dot(h1, w2, precision=hp) + b2, 0.0)
    return jnp.dot(h2, w3, precision=hp) + b3


if __name__ == "__main__":
    key = jax.random.PRNGKey(0)
    k_params, k_x = jax.random.split(key)
    raw_params = init_params(k_params)
    kernel_params = prepare_params(raw_params)

    B = 8  # small demo batch; ragged vs the tile, handled by wrapper padding
    x = jax.random.normal(k_x, (B, IN_FEATURES), jnp.float32)

    out = object_classification_forward(x, kernel_params)
    out = jax.block_until_ready(out)

    ref = reference_forward(x, raw_params)
    assert out.shape == (B, NUM_CLASSES)
    assert jnp.allclose(out, ref, atol=1e-4, rtol=1e-4), "mismatch vs reference"

    print("KERNEL_OK")
</pallas_src>

<mosaic_0001>
module attributes {stable_mosaic.version = 11 : i64} {
  func.func @_mlp_kernel(%arg0: i32, %arg1: memref<256x8xf32, #tpu.memory_space<vmem>>, %arg2: memref<8x64xf32, #tpu.memory_space<vmem>>, %arg3: memref<1x64xf32, #tpu.memory_space<vmem>>, %arg4: memref<64x32xf32, #tpu.memory_space<vmem>>, %arg5: memref<1x32xf32, #tpu.memory_space<vmem>>, %arg6: memref<32x5xf32, #tpu.memory_space<vmem>>, %arg7: memref<1x5xf32, #tpu.memory_space<vmem>>, %arg8: memref<256x5xf32, #tpu.memory_space<vmem>>) attributes {dimension_semantics = [#tpu.dimension_semantics<parallel>], iteration_bounds = array<i64: 1>, scalar_prefetch = 0 : i64, scratch_operands = 0 : i64, tpu.core_type = #tpu.core_type<tc>, window_params = [{transform_indices = @transform_0, window_bounds = array<i64: 256, 8>}, {pipeline_mode = #tpu.pipeline_mode<synchronous>, transform_indices = @transform_1, window_bounds = array<i64: 8, 64>}, {pipeline_mode = #tpu.pipeline_mode<synchronous>, transform_indices = @transform_2, window_bounds = array<i64: 1, 64>}, {pipeline_mode = #tpu.pipeline_mode<synchronous>, transform_indices = @transform_3, window_bounds = array<i64: 64, 32>}, {pipeline_mode = #tpu.pipeline_mode<synchronous>, transform_indices = @transform_4, window_bounds = array<i64: 1, 32>}, {pipeline_mode = #tpu.pipeline_mode<synchronous>, transform_indices = @transform_5, window_bounds = array<i64: 32, 5>}, {pipeline_mode = #tpu.pipeline_mode<synchronous>, transform_indices = @transform_6, window_bounds = array<i64: 1, 5>}, {transform_indices = @transform_7, window_bounds = array<i64: 256, 5>}]} {
    %c0 = arith.constant 0 : index
    %c0_0 = arith.constant 0 : index
    %0 = vector.load %arg1[%c0, %c0_0] : memref<256x8xf32, #tpu.memory_space<vmem>>, vector<256x8xf32>
    %c0_1 = arith.constant 0 : index
    %c0_2 = arith.constant 0 : index
    %1 = vector.load %arg2[%c0_1, %c0_2] : memref<8x64xf32, #tpu.memory_space<vmem>>, vector<8x64xf32>
    %cst = arith.constant dense<0.000000e+00> : vector<256x64xf32>
    %2 = tpu.matmul %0, %1, %cst {dimension_numbers = #tpu.dot_dimension_numbers<[1], [0], [0], [1], [0, 0, 1, 1], [], []>} : vector<256x8xf32>, vector<8x64xf32>, vector<256x64xf32> -> vector<256x64xf32>
    %c0_3 = arith.constant 0 : index
    %c0_4 = arith.constant 0 : index
    %3 = vector.load %arg3[%c0_3, %c0_4] : memref<1x64xf32, #tpu.memory_space<vmem>>, vector<1x64xf32>
    %4 = vector.broadcast %3 : vector<1x64xf32> to vector<256x64xf32>
    %5 = arith.addf %2, %4 : vector<256x64xf32>
    %cst_5 = arith.constant 0.000000e+00 : f32
    %6 = vector.broadcast %cst_5 : f32 to vector<256x64xf32>
    %7 = arith.maximumf %5, %6 : vector<256x64xf32>
    %c0_6 = arith.constant 0 : index
    %c0_7 = arith.constant 0 : index
    %8 = vector.load %arg4[%c0_6, %c0_7] : memref<64x32xf32, #tpu.memory_space<vmem>>, vector<64x32xf32>
    %cst_8 = arith.constant dense<0.000000e+00> : vector<256x32xf32>
    %9 = tpu.matmul %7, %8, %cst_8 {dimension_numbers = #tpu.dot_dimension_numbers<[1], [0], [0], [1], [0, 0, 1, 1], [], []>} : vector<256x64xf32>, vector<64x32xf32>, vector<256x32xf32> -> vector<256x32xf32>
    %c0_9 = arith.constant 0 : index
    %c0_10 = arith.constant 0 : index
    %10 = vector.load %arg5[%c0_9, %c0_10] : memref<1x32xf32, #tpu.memory_space<vmem>>, vector<1x32xf32>
    %11 = vector.broadcast %10 : vector<1x32xf32> to vector<256x32xf32>
    %12 = arith.addf %9, %11 : vector<256x32xf32>
    %cst_11 = arith.constant 0.000000e+00 : f32
    %13 = vector.broadcast %cst_11 : f32 to vector<256x32xf32>
    %14 = arith.maximumf %12, %13 : vector<256x32xf32>
    %c0_12 = arith.constant 0 : index
    %c0_13 = arith.constant 0 : index
    %15 = vector.load %arg6[%c0_12, %c0_13] : memref<32x5xf32, #tpu.memory_space<vmem>>, vector<32x5xf32>
    %cst_14 = arith.constant dense<0.000000e+00> : vector<256x5xf32>
    %16 = tpu.matmul %14, %15, %cst_14 {dimension_numbers = #tpu.dot_dimension_numbers<[1], [0], [0], [1], [0, 0, 1, 1], [], []>} : vector<256x32xf32>, vector<32x5xf32>, vector<256x5xf32> -> vector<256x5xf32>
    %c0_15 = arith.constant 0 : index
    %c0_16 = arith.constant 0 : index
    %17 = vector.load %arg7[%c0_15, %c0_16] : memref<1x5xf32, #tpu.memory_space<vmem>>, vector<1x5xf32>
    %18 = vector.broadcast %17 : vector<1x5xf32> to vector<256x5xf32>
    %19 = arith.addf %16, %18 : vector<256x5xf32>
    %c0_17 = arith.constant 0 : index
    %c0_18 = arith.constant 0 : index
    %20 = vector.load %arg8[%c0_17, %c0_18] : memref<256x5xf32, #tpu.memory_space<vmem>>, vector<256x5xf32>
    tpu.vector_store %arg8[%c0_17, %c0_18], %19 {strides = array<i32>} : memref<256x5xf32, #tpu.memory_space<vmem>>, vector<256x5xf32>,
    return
  }
  func.func @transform_0(%arg0: i32) -> (i32, i32) {
    %c0_i32 = arith.constant 0 : i32
    %c0_i32_0 = arith.constant 0 : i32
    return %arg0, %c0_i32 : i32, i32
  }
  func.func @transform_1(%arg0: i32) -> (i32, i32) {
    %c0_i32 = arith.constant 0 : i32
    %c0_i32_0 = arith.constant 0 : i32
    %c0_i32_1 = arith.constant 0 : i32
    return %c0_i32, %c0_i32_0 : i32, i32
  }
  func.func @transform_2(%arg0: i32) -> (i32, i32) {
    %c0_i32 = arith.constant 0 : i32
    %c0_i32_0 = arith.constant 0 : i32
    %c0_i32_1 = arith.constant 0 : i32
    return %c0_i32, %c0_i32_0 : i32, i32
  }
  func.func @transform_3(%arg0: i32) -> (i32, i32) {
    %c0_i32 = arith.constant 0 : i32
    %c0_i32_0 = arith.constant 0 : i32
    %c0_i32_1 = arith.constant 0 : i32
    return %c0_i32, %c0_i32_0 : i32, i32
  }
  func.func @transform_4(%arg0: i32) -> (i32, i32) {
    %c0_i32 = arith.constant 0 : i32
    %c0_i32_0 = arith.constant 0 : i32
    %c0_i32_1 = arith.constant 0 : i32
    return %c0_i32, %c0_i32_0 : i32, i32
  }
  func.func @transform_5(%arg0: i32) -> (i32, i32) {
    %c0_i32 = arith.constant 0 : i32
    %c0_i32_0 = arith.constant 0 : i32
    %c0_i32_1 = arith.constant 0 : i32
    return %c0_i32, %c0_i32_0 : i32, i32
  }
  func.func @transform_6(%arg0: i32) -> (i32, i32) {
    %c0_i32 = arith.constant 0 : i32
    %c0_i32_0 = arith.constant 0 : i32
    %c0_i32_1 = arith.constant 0 : i32
    return %c0_i32, %c0_i32_0 : i32, i32
  }
  func.func @transform_7(%arg0: i32) -> (i32, i32) {
    %c0_i32 = arith.constant 0 : i32
    %c0_i32_0 = arith.constant 0 : i32
    return %arg0, %c0_i32 : i32, i32
  }
}

</mosaic_0001>

<bundles_post_ra>
// kernel: object_classification_forward.1
= control target key start
LH: loop header
LB: loop body
LE: loop exit
PB: predicated region body
PF: predicated region fallthrough
CT: control target
= control target key end

     0   :  { %vm66_vm0 = vcmask 64512   ;;  %vm435_vm1 = vcmask 523264   ;;  %vm800_vm2 = vcmask 261120   ;;  %vm1122_vm3 = vcmask 39936   ;;  %s2085_s1 = inlined_call_operand.vmem [shape: f32[8,64], index: 1, kind: input, shape index: {}]   ;;  %s2086_s0 = inlined_call_operand.vmem [shape: f32[256,8], index: 0, kind: input, shape index: {}]   ;;  %s2087_s3 = inlined_call_operand.vmem [shape: f32[64,32], index: 3, kind: input, shape index: {}]   ;;  %s2088_s5 = inlined_call_operand.vmem [shape: f32[32,5], index: 5, kind: input, shape index: {}]   ;;  %s2089_s2 = inlined_call_operand.vmem [shape: f32[1,64], index: 2, kind: input, shape index: {}]   ;;  %s2090_s4 = inlined_call_operand.vmem [shape: f32[1,32], index: 4, kind: input, shape index: {}]   ;;  %s2091_s6 = inlined_call_operand.vmem [shape: f32[1,5], index: 6, kind: input, shape index: {}]   ;;  %s2092_s7 = inlined_call_operand.vmem [shape: f32[256,5], index: 7, kind: output, shape index: {}]  }
   0x1   :  { %v58_v0 = vld [vmem:[%s2085_s1] sm:$0xff]  ;;  %v27_v2 = vld [vmem:[%s2086_s0 + $0x8] sm:$0xff]  ;;  %v28_v3 = vld [vmem:[%s2086_s0 + $0x10] sm:$0xff] }
   0x2   :  { %v26_v1 = vld [vmem:[%s2086_s0] sm:$0xff]  ;;  %1367 = vmatprep.subr.mxu0 %v58_v0  ;;  %1561 = vmatprep.subr.mxu1 %v58_v0  ;;  %v29_v4 = vld [vmem:[%s2086_s0 + $0x18] sm:$0xff]  ;;  %v43_v7 = vld [vmem:[%s2086_s0 + $0x88] sm:$0xff] }
   0x3   :  { %1369 = vmatprep.mubr.msk.f32.mxu0 %vm66_vm0, %v26_v1  ;;  %1368 = vmatpush3.msra.mxu0 %v58_v0  ;;  %v30_v5 = vld [vmem:[%s2086_s0 + $0x20] sm:$0xff]  ;;  %v44_v8 = vld [vmem:[%s2086_s0 + $0x90] sm:$0xff]  ;;  %v31_v9 = vld [vmem:[%s2086_s0 + $0x28] sm:$0xff] }
   0x4   :  { %1370 = vmatmul.mubr.msk.f32.vlgmr.msra.gmra.mrb[0].mxu0 %vm66_vm0, %v27_v2  ;;  %1562 = vmatpush3.msra.mxu1 %v58_v0  ;;  %v42_v6 = vld [vmem:[%s2086_s0 + $0x80] sm:$0xff]  ;;  %v45_v10 = vld [vmem:[%s2086_s0 + $0x98] sm:$0xff]  ;;  %v32_v11 = vld [vmem:[%s2086_s0 + $0x30] sm:$0xff] }
   0x5   :  { %1372 = vmatprep.mubr.msk.f32.mxu0 %vm66_vm0, %v28_v3  ;;  %1393 = vmatprep.mubr.msk.f32.mxu1 %vm66_vm0, %v42_v6  ;;  %v46_v12 = vld [vmem:[%s2086_s0 + $0xa0] sm:$0xff]  ;;  %v421_v14 = vld [vmem:[%s2087_s3 + $0x8] sm:$0xff]  ;;  %v422_v15 = vld [vmem:[%s2087_s3 + $0x10] sm:$0xff] }
   0x6   :  { %1394 = vmatmul.mubr.msk.f32.vlgmr.msra.gmra.mrb[0].mxu1 %vm66_vm0, %v43_v7  ;;  %v420_v13 = vld [vmem:[%s2087_s3] sm:$0xff]  ;;  %v33_v16 = vld [vmem:[%s2086_s0 + $0x38] sm:$0xff]  ;;  %v47_v17 = vld [vmem:[%s2086_s0 + $0xa8] sm:$0xff] }
   0x7   :  { %1396 = vmatprep.mubr.msk.f32.mxu1 %vm66_vm0, %v44_v8  ;;  %v1537_v18 = vpack.c.bf16 %v421_v14, %v420_v13  ;;  %v423_v19 = vld [vmem:[%s2087_s3 + $0x18] sm:$0xff]  ;;  %v34_v20 = vld [vmem:[%s2086_s0 + $0x40] sm:$0xff]  ;;  %v48_v21 = vld [vmem:[%s2086_s0 + $0xb0] sm:$0xff] }
   0x8   :  { %1373 = vmatmul.mubr.msk.f32.gmra.mrb[2].mxu0 %vm66_vm0, %v29_v4  ;;  %v1541_v22 = vpack.c.bf16 %v423_v19, %v422_v15  ;;  %v424_v23 = vld [vmem:[%s2087_s3 + $0x20] sm:$0xff]  ;;  %v425_v24 = vld [vmem:[%s2087_s3 + $0x28] sm:$0xff]  ;;  %v49_v26 = vld [vmem:[%s2086_s0 + $0xb8] sm:$0xff] }
   0x9   :  { %1375 = vmatprep.mubr.msk.f32.mxu0 %vm66_vm0, %v30_v5  ;;  %1538 = vmatprep.subr.bf16.mxu1 %v1537_v18  ;;  %v35_v25 = vld [vmem:[%s2086_s0 + $0x48] sm:$0xff]  ;;  %v36_v27 = vld [vmem:[%s2086_s0 + $0x50] sm:$0xff]  ;;  %v50_v28 = vld [vmem:[%s2086_s0 + $0xc0] sm:$0xff]  ;;  %v1545_v29 = vpack.c.bf16 %v425_v24, %v424_v23 }
   0xa   :  { %1397 = vmatmul.mubr.msk.f32.gmra.mrb[2].mxu1 %vm66_vm0, %v45_v10  ;;  %v426_v30 = vld [vmem:[%s2087_s3 + $0x30] sm:$0xff]  ;;  %v427_v31 = vld [vmem:[%s2087_s3 + $0x38] sm:$0xff]  ;;  %v51_v33 = vld [vmem:[%s2086_s0 + $0xc8] sm:$0xff] }
   0xb   :  { %1399 = vmatprep.mubr.msk.f32.mxu1 %vm66_vm0, %v46_v12  ;;  %1540 = vmatpush3.bf16.msra.mxu1 %v1537_v18  ;;  %v37_v32 = vld [vmem:[%s2086_s0 + $0x58] sm:$0xff]  ;;  %v38_v34 = vld [vmem:[%s2086_s0 + $0x60] sm:$0xff]  ;;  %v52_v35 = vld [vmem:[%s2086_s0 + $0xd0] sm:$0xff]  ;;  %v1549_v36 = vpack.c.bf16 %v427_v31, %v426_v30 }
   0xc   :  { %1376 = vmatmul.mubr.msk.f32.gmra.mrb[4].mxu0 %vm66_vm0, %v31_v9  ;;  %1542 = vmatprep.subr.bf16.mxu1 %v1541_v22  ;;  %v39_v37 = vld [vmem:[%s2086_s0 + $0x68] sm:$0xff]  ;;  %v53_v38 = vld [vmem:[%s2086_s0 + $0xd8] sm:$0xff]  ;;  %v40_v39 = vld [vmem:[%s2086_s0 + $0x70] sm:$0xff] }
   0xd   :  { %1378 = vmatprep.mubr.msk.f32.mxu0 %vm66_vm0, %v32_v11  ;;  %v54_v40 = vld [vmem:[%s2086_s0 + $0xe0] sm:$0xff]  ;;  %v41_v41 = vld [vmem:[%s2086_s0 + $0x78] sm:$0xff]  ;;  %v55_v42 = vld [vmem:[%s2086_s0 + $0xe8] sm:$0xff] }
   0xe   :  { %1400 = vmatmul.mubr.msk.f32.gmra.mrb[4].mxu1 %vm66_vm0, %v47_v17  ;;  %v56_v43 = vld [vmem:[%s2086_s0 + $0xf0] sm:$0xff]  ;;  %v57_v44 = vld [vmem:[%s2086_s0 + $0xf8] sm:$0xff]  ;;  %v789_v45 = vld [vmem:[%s2088_s5] sm:$0xff] }
   0xf   :  { %1402 = vmatprep.mubr.msk.f32.mxu1 %vm66_vm0, %v48_v21  ;;  %1544 = vmatpush3.bf16.msra.mxu1 %v1541_v22  ;;  %v790_v46 = vld [vmem:[%s2088_s5 + $0x8] sm:$0xff]  ;;  %v791_v47 = vld [vmem:[%s2088_s5 + $0x10] sm:$0xff]  ;;  %v792_v49 = vld [vmem:[%s2088_s5 + $0x18] sm:$0xff] }
  0x10   :  { %1379 = vmatmul.mubr.msk.f32.gmra.mrb[6].mxu0 %vm66_vm0, %v33_v16  ;;  %1546 = vmatprep.subr.bf16.mxu1 %v1545_v29  ;;  %v1553_v48 = vpack.c.bf16 %v790_v46, %v789_v45  ;;  %v1557_v50 = vpack.c.bf16 %v792_v49, %v791_v47  ;;  %v1773_v51 = vld [vmem:[%s2089_s2] ss:$0 sm:$0xff] }
  0x11   :  { %1381 = vmatprep.mubr.msk.f32.mxu0 %vm66_vm0, %v34_v20 }
  0x12   :  { %1403 = vmatmul.mubr.msk.f32.gmra.mrb[6].mxu1 %vm66_vm0, %v49_v26  ;;  %1554 = vmatprep.subr.bf16.mxu0 %v1553_v48 }
  0x13   :  { %1405 = vmatprep.mubr.msk.f32.mxu1 %vm66_vm0, %v50_v28  ;;  %1548 = vmatpush3.bf16.msra.mxu1 %v1545_v29 }
  0x14   :  { %1382 = vmatmul.mubr.msk.f32.gmra.mrb[8].mxu0 %vm66_vm0, %v35_v25  ;;  %1550 = vmatprep.subr.bf16.mxu1 %v1549_v36 }
  0x15   :  { %1384 = vmatprep.mubr.msk.f32.mxu0 %vm66_vm0, %v36_v27  ;;  %1556 = vmatpush3.bf16.msra.mxu0 %v1553_v48 }
  0x16   :  { %1406 = vmatmul.mubr.msk.f32.gmra.mrb[8].mxu1 %vm66_vm0, %v51_v33  ;;  %1558 = vmatprep.subr.bf16.mxu0 %v1557_v50 }
  0x17   :  { %1408 = vmatprep.mubr.msk.f32.mxu1 %vm66_vm0, %v52_v35  ;;  %1552 = vmatpush3.bf16.msra.mxu1 %v1549_v36 }
  0x18   :  { %1385 = vmatmul.mubr.msk.f32.gmra.mrb[10].mxu0 %vm66_vm0, %v37_v32 }
  0x19   :  { %1387 = vmatprep.mubr.msk.f32.mxu0 %vm66_vm0, %v38_v34  ;;  %1560 = vmatpush3.bf16.msra.mxu0 %v1557_v50 }
  0x1a   :  { %1409 = vmatmul.mubr.msk.f32.gmra.mrb[10].mxu1 %vm66_vm0, %v53_v38 }
  0x1b   :  { %1411 = vmatprep.mubr.msk.f32.mxu1 %vm66_vm0, %v54_v40 }
  0x1c   :  { %1388 = vmatmul.mubr.msk.f32.gmra.mrb[12].mxu0 %vm66_vm0, %v39_v37 }
  0x1d   :  { %1390 = vmatprep.mubr.msk.f32.mxu0 %vm66_vm0, %v40_v39 }
  0x1e   :  { %1412 = vmatmul.mubr.msk.f32.gmra.mrb[12].mxu1 %vm66_vm0, %v55_v42 }
  0x1f   :  { %1414 = vmatprep.mubr.msk.f32.mxu1 %vm66_vm0, %v56_v43 }
  0x20   :  { %1391 = vmatmul.mubr.msk.f32.gmra.mrb[14].mxu0 %vm66_vm0, %v41_v41 }
  0x22   :  { %1415 = vmatmul.mubr.msk.f32.gmra.mrb[14].mxu1 %vm66_vm0, %v57_v44 }
  0xd7   :  { %v1371_v52 = vpop.f32.mrb[0].mxu0 }
  0xd8   :  { %v235_v53 = vadd.f32 %v1371_v52, %v1773_v51  ;;  %v229_v54 = vpop.f32.mrb[1].mxu0 }
  0xd9   :  { %v230_v55 = vadd.f32 %v1773_v51, %v229_v54  ;;  %v1777_v58 = vpop.f32.mrb[0].mxu1 }
  0xda   :  { %v389_v59 = vmax.f32 %v235_v53, 0.0  ;;  %v309_v62 = vpop.f32.mrb[1].mxu1 }
  0xdb   :  { %v388_v56 = vmax.f32 %v230_v55, 0.0  ;;  %v1374_v57 = vpop.f32.mrb[2].mxu0  ;;  %v310_v42 = vadd.f32 %v1773_v51, %v309_v62  ;;  %v315_v55 = vadd.f32 %v1777_v58, %v1773_v51 }
  0xdc   :  { %v245_v60 = vadd.f32 %v1374_v57, %v1773_v51  ;;  %v239_v61 = vpop.f32.mrb[3].mxu0 }
  0xdd   :  { %v240_v63 = vadd.f32 %v1773_v51, %v239_v61  ;;  %1433 = vmatprep.mubr.msk.f32.mxu1 %vm435_vm1, %v388_v56  ;;  %v1783_v2 = vpop.f32.mrb[2].mxu1  ;;  %v404_v50 = vmax.f32 %v310_v42, 0.0 }
  0xde   :  { %1434 = vmatmul.mubr.msk.f32.vlgmr.msra.gmra.mrb[16].mxu1 %vm435_vm1, %v389_v59  ;;  %v391_v3 = vmax.f32 %v245_v60, 0.0  ;;  %v319_v6 = vpop.f32.mrb[3].mxu1  ;;  %v405_v60 = vmax.f32 %v315_v55, 0.0  ;;  %v325_v61 = vadd.f32 %v1783_v2, %v1773_v51 }
  0xdf   :  { %v390_v0 = vmax.f32 %v240_v63, 0.0  ;;  %v1377_v1 = vpop.f32.mrb[4].mxu0  ;;  %v320_v52 = vadd.f32 %v1773_v51, %v319_v6 }
  0xe0   :  { %v255_v4 = vadd.f32 %v1377_v1, %v1773_v51  ;;  %v249_v5 = vpop.f32.mrb[5].mxu0  ;;  %v407_v63 = vmax.f32 %v325_v61, 0.0 }
  0xe1   :  { %v250_v7 = vadd.f32 %v1773_v51, %v249_v5  ;;  %1436 = vmatprep.mubr.msk.f32.mxu1 %vm435_vm1, %v390_v0  ;;  %v1789_v10 = vpop.f32.mrb[4].mxu1  ;;  %v406_v57 = vmax.f32 %v320_v52, 0.0 }
  0xe2   :  { %1437 = vmatmul.mubr.msk.f32.gmra.mrb[18].mxu1 %vm435_vm1, %v391_v3  ;;  %v393_v11 = vmax.f32 %v255_v4, 0.0  ;;  %v329_v14 = vpop.f32.mrb[5].mxu1  ;;  %v335_v0 = vadd.f32 %v1789_v10, %v1773_v51 }
  0xe3   :  { %v392_v8 = vmax.f32 %v250_v7, 0.0  ;;  %v1380_v9 = vpop.f32.mrb[6].mxu0  ;;  %v330_v59 = vadd.f32 %v1773_v51, %v329_v14 }
  0xe4   :  { %v265_v12 = vadd.f32 %v1380_v9, %v1773_v51  ;;  %v259_v13 = vpop.f32.mrb[7].mxu0  ;;  %v409_v4 = vmax.f32 %v335_v0, 0.0 }
  0xe5   :  { %v260_v15 = vadd.f32 %v1773_v51, %v259_v13  ;;  %1439 = vmatprep.mubr.msk.f32.mxu1 %vm435_vm1, %v392_v8  ;;  %v1795_v18 = vpop.f32.mrb[6].mxu1  ;;  %v408_v62 = vmax.f32 %v330_v59, 0.0 }
  0xe6   :  { %1440 = vmatmul.mubr.msk.f32.gmra.mrb[20].mxu1 %vm435_vm1, %v393_v11  ;;  %v395_v19 = vmax.f32 %v265_v12, 0.0  ;;  %v339_v22 = vpop.f32.mrb[7].mxu1  ;;  %v345_v2 = vadd.f32 %v1795_v18, %v1773_v51 }
  0xe7   :  { %v394_v16 = vmax.f32 %v260_v15, 0.0  ;;  %v1383_v17 = vpop.f32.mrb[8].mxu0  ;;  %v340_v58 = vadd.f32 %v1773_v51, %v339_v22 }
  0xe8   :  { %v275_v20 = vadd.f32 %v1383_v17, %v1773_v51  ;;  %v269_v21 = vpop.f32.mrb[9].mxu0  ;;  %v411_v7 = vmax.f32 %v345_v2, 0.0 }
  0xe9   :  { %v270_v23 = vadd.f32 %v1773_v51, %v269_v21  ;;  %1442 = vmatprep.mubr.msk.f32.mxu1 %vm435_vm1, %v394_v16  ;;  %v1407_v26 = vpop.f32.mrb[8].mxu1  ;;  %v410_v1 = vmax.f32 %v340_v58, 0.0  ;;  %v1854_v21 = vld [vmem:[%s2090_s4] ss:$0 sm:$0xff] }
  0xea   :  { %1443 = vmatmul.mubr.msk.f32.gmra.mrb[22].mxu1 %vm435_vm1, %v395_v19  ;;  %v397_v27 = vmax.f32 %v275_v20, 0.0  ;;  %v349_v30 = vpop.f32.mrb[9].mxu1  ;;  %v355_v8 = vadd.f32 %v1407_v26, %v1773_v51 }
  0xeb   :  { %v396_v24 = vmax.f32 %v270_v23, 0.0  ;;  %v1386_v25 = vpop.f32.mrb[10].mxu0  ;;  %v350_v3 = vadd.f32 %v1773_v51, %v349_v30 }
  0xec   :  { %v285_v28 = vadd.f32 %v1386_v25, %v1773_v51  ;;  %v279_v29 = vpop.f32.mrb[11].mxu0  ;;  %v413_v11 = vmax.f32 %v355_v8, 0.0 }
  0xed   :  { %v280_v31 = vadd.f32 %v1773_v51, %v279_v29  ;;  %1445 = vmatprep.mubr.msk.f32.mxu1 %vm435_vm1, %v396_v24  ;;  %v1410_v34 = vpop.f32.mrb[10].mxu1  ;;  %v412_v5 = vmax.f32 %v350_v3, 0.0 }
  0xee   :  { %1446 = vmatmul.mubr.msk.f32.gmra.mrb[24].mxu1 %vm435_vm1, %v397_v27  ;;  %v399_v35 = vmax.f32 %v285_v28, 0.0  ;;  %v359_v38 = vpop.f32.mrb[11].mxu1  ;;  %v365_v12 = vadd.f32 %v1410_v34, %v1773_v51 }
  0xef   :  { %v398_v32 = vmax.f32 %v280_v31, 0.0  ;;  %v1389_v33 = vpop.f32.mrb[12].mxu0  ;;  %v360_v6 = vadd.f32 %v1773_v51, %v359_v38 }
  0xf0   :  { %v295_v36 = vadd.f32 %v1389_v33, %v1773_v51  ;;  %v289_v37 = vpop.f32.mrb[13].mxu0  ;;  %v415_v15 = vmax.f32 %v365_v12, 0.0 }
  0xf1   :  { %v290_v39 = vadd.f32 %v1773_v51, %v289_v37  ;;  %1448 = vmatprep.mubr.msk.f32.mxu1 %vm435_vm1, %v398_v32  ;;  %v1413_v43 = vpop.f32.mrb[12].mxu1  ;;  %v414_v9 = vmax.f32 %v360_v6, 0.0 }
  0xf2   :  { %1449 = vmatmul.mubr.msk.f32.gmra.mrb[26].mxu1 %vm435_vm1, %v399_v35  ;;  %v401_v44 = vmax.f32 %v295_v36, 0.0  ;;  %v369_v47 = vpop.f32.mrb[13].mxu1  ;;  %v375_v16 = vadd.f32 %v1413_v43, %v1773_v51 }
  0xf3   :  { %v400_v40 = vmax.f32 %v290_v39, 0.0  ;;  %v1392_v41 = vpop.f32.mrb[14].mxu0  ;;  %v370_v10 = vadd.f32 %v1773_v51, %v369_v47 }
  0xf4   :  { %v305_v45 = vadd.f32 %v1392_v41, %v1773_v51  ;;  %v299_v46 = vpop.f32.mrb[15].mxu0  ;;  %v417_v18 = vmax.f32 %v375_v16, 0.0 }
  0xf5   :  { %v300_v48 = vadd.f32 %v1773_v51, %v299_v46  ;;  %1451 = vmatprep.mubr.msk.f32.mxu1 %vm435_vm1, %v400_v40  ;;  %v1416_v53 = vpop.f32.mrb[14].mxu1  ;;  %v416_v13 = vmax.f32 %v370_v10, 0.0 }
  0xf6   :  { %1452 = vmatmul.mubr.msk.f32.gmra.mrb[28].mxu1 %vm435_vm1, %v401_v44  ;;  %v403_v54 = vmax.f32 %v305_v45, 0.0  ;;  %v379_v56 = vpop.f32.mrb[15].mxu1  ;;  %v385_v19 = vadd.f32 %v1416_v53, %v1773_v51 }
  0xf7   :  { %v402_v49 = vmax.f32 %v300_v48, 0.0  ;;  %v380_v14 = vadd.f32 %v1773_v51, %v379_v56 }
  0xf8   :  { %v419_v20 = vmax.f32 %v385_v19, 0.0 }
  0xf9   :  { %1454 = vmatprep.mubr.msk.f32.mxu1 %vm435_vm1, %v402_v49  ;;  %v418_v17 = vmax.f32 %v380_v14, 0.0 }
  0xfa   :  { %1455 = vmatmul.mubr.msk.f32.gmra.mrb[30].mxu1 %vm435_vm1, %v403_v54 }
  0xfb   :  { %1457 = vmatprep.mubr.msk.f32.mxu1 %vm435_vm1, %v404_v50 }
  0xfe   :  { %1458 = vmatmul.mubr.msk.f32.gmra.mrb[32].mxu1 %vm435_vm1, %v405_v60 }
  0xff   :  { %1460 = vmatprep.mubr.msk.f32.mxu1 %vm435_vm1, %v406_v57 }
 0x102   :  { %1461 = vmatmul.mubr.msk.f32.gmra.mrb[34].mxu1 %vm435_vm1, %v407_v63 }
 0x103   :  { %1463 = vmatprep.mubr.msk.f32.mxu1 %vm435_vm1, %v408_v62 }
 0x106   :  { %1464 = vmatmul.mubr.msk.f32.gmra.mrb[36].mxu1 %vm435_vm1, %v409_v4 }
 0x107   :  { %1466 = vmatprep.mubr.msk.f32.mxu1 %vm435_vm1, %v410_v1 }
 0x10a   :  { %1467 = vmatmul.mubr.msk.f32.gmra.mrb[38].mxu1 %vm435_vm1, %v411_v7 }
 0x10b   :  { %1469 = vmatprep.mubr.msk.f32.mxu1 %vm435_vm1, %v412_v5 }
 0x10e   :  { %1470 = vmatmul.mubr.msk.f32.gmra.mrb[40].mxu1 %vm435_vm1, %v413_v11 }
 0x10f   :  { %1472 = vmatprep.mubr.msk.f32.mxu1 %vm435_vm1, %v414_v9 }
 0x112   :  { %1473 = vmatmul.mubr.msk.f32.gmra.mrb[42].mxu1 %vm435_vm1, %v415_v15 }
 0x113   :  { %1475 = vmatprep.mubr.msk.f32.mxu1 %vm435_vm1, %v416_v13 }
 0x116   :  { %1476 = vmatmul.mubr.msk.f32.gmra.mrb[44].mxu1 %vm435_vm1, %v417_v18 }
 0x117   :  { %1478 = vmatprep.mubr.msk.f32.mxu1 %vm435_vm1, %v418_v17 }
 0x11a   :  { %1479 = vmatmul.mubr.msk.f32.gmra.mrb[46].mxu1 %vm435_vm1, %v419_v20 }
 0x1b1   :  { %v1435_v22 = vpop.f32.mrb[16].mxu1 }
 0x1b2   :  { %v604_v23 = vadd.f32 %v1435_v22, %v1854_v21  ;;  %v598_v24 = vpop.f32.mrb[17].mxu1 }
 0x1b3   :  { %v599_v25 = vadd.f32 %v1854_v21, %v598_v24 }
 0x1b4   :  { %v758_v27 = vmax.f32 %v604_v23, 0.0 }
 0x1b5   :  { %v757_v51 = vmax.f32 %v599_v25, 0.0  ;;  %v1438_v26 = vpop.f32.mrb[18].mxu1 }
 0x1b6   :  { %v614_v28 = vadd.f32 %v1438_v26, %v1854_v21  ;;  %v608_v29 = vpop.f32.mrb[19].mxu1 }
 0x1b7   :  { %v609_v30 = vadd.f32 %v1854_v21, %v608_v29  ;;  %1489 = vmatprep.mubr.msk.f32.mxu0 %vm800_vm2, %v757_v51 }
 0x1b8   :  { %1490 = vmatmul.mubr.msk.f32.vlgmr.msra.gmra.mrb[16].mxu0 %vm800_vm2, %v758_v27  ;;  %v760_v33 = vmax.f32 %v614_v28, 0.0 }
 0x1b9   :  { %v759_v31 = vmax.f32 %v609_v30, 0.0  ;;  %v1441_v32 = vpop.f32.mrb[20].mxu1 }
 0x1ba   :  { %v624_v34 = vadd.f32 %v1441_v32, %v1854_v21  ;;  %v618_v35 = vpop.f32.mrb[21].mxu1 }
 0x1bb   :  { %v619_v36 = vadd.f32 %v1854_v21, %v618_v35  ;;  %1492 = vmatprep.mubr.msk.f32.mxu0 %vm800_vm2, %v759_v31 }
 0x1bc   :  { %1493 = vmatmul.mubr.msk.f32.gmra.mrb[18].mxu0 %vm800_vm2, %v760_v33  ;;  %v762_v39 = vmax.f32 %v624_v34, 0.0 }
 0x1bd   :  { %v761_v37 = vmax.f32 %v619_v36, 0.0  ;;  %v1444_v38 = vpop.f32.mrb[22].mxu1 }
 0x1be   :  { %v634_v40 = vadd.f32 %v1444_v38, %v1854_v21  ;;  %v628_v41 = vpop.f32.mrb[23].mxu1 }
 0x1bf   :  { %v629_v42 = vadd.f32 %v1854_v21, %v628_v41  ;;  %1495 = vmatprep.mubr.msk.f32.mxu0 %vm800_vm2, %v761_v37 }
 0x1c0   :  { %1496 = vmatmul.mubr.msk.f32.gmra.mrb[20].mxu0 %vm800_vm2, %v762_v39  ;;  %v764_v45 = vmax.f32 %v634_v40, 0.0 }
 0x1c1   :  { %v763_v43 = vmax.f32 %v629_v42, 0.0  ;;  %v1447_v44 = vpop.f32.mrb[24].mxu1 }
 0x1c2   :  { %v644_v46 = vadd.f32 %v1447_v44, %v1854_v21  ;;  %v638_v47 = vpop.f32.mrb[25].mxu1 }
 0x1c3   :  { %v639_v48 = vadd.f32 %v1854_v21, %v638_v47  ;;  %1498 = vmatprep.mubr.msk.f32.mxu0 %vm800_vm2, %v763_v43 }
 0x1c4   :  { %1499 = vmatmul.mubr.msk.f32.gmra.mrb[22].mxu0 %vm800_vm2, %v764_v45  ;;  %v766_v52 = vmax.f32 %v644_v46, 0.0 }
 0x1c5   :  { %v765_v49 = vmax.f32 %v639_v48, 0.0  ;;  %v1450_v50 = vpop.f32.mrb[26].mxu1 }
 0x1c6   :  { %v654_v53 = vadd.f32 %v1450_v50, %v1854_v21  ;;  %v648_v54 = vpop.f32.mrb[27].mxu1 }
 0x1c7   :  { %v649_v55 = vadd.f32 %v1854_v21, %v648_v54  ;;  %1501 = vmatprep.mubr.msk.f32.mxu0 %vm800_vm2, %v765_v49 }
 0x1c8   :  { %1502 = vmatmul.mubr.msk.f32.gmra.mrb[24].mxu0 %vm800_vm2, %v766_v52  ;;  %v768_v59 = vmax.f32 %v654_v53, 0.0 }
 0x1c9   :  { %v767_v56 = vmax.f32 %v649_v55, 0.0  ;;  %v1453_v57 = vpop.f32.mrb[28].mxu1  ;;  %v1923_v55 = vld [vmem:[%s2091_s6] ss:$0 sm:$0xff] }
 0x1ca   :  { %v664_v60 = vadd.f32 %v1453_v57, %v1854_v21  ;;  %v658_v61 = vpop.f32.mrb[29].mxu1 }
 0x1cb   :  { %v659_v62 = vadd.f32 %v1854_v21, %v658_v61  ;;  %1504 = vmatprep.mubr.msk.f32.mxu0 %vm800_vm2, %v767_v56 }
 0x1cc   :  { %1505 = vmatmul.mubr.msk.f32.gmra.mrb[26].mxu0 %vm800_vm2, %v768_v59  ;;  %v770_v0 = vmax.f32 %v664_v60, 0.0 }
 0x1cd   :  { %v769_v58 = vmax.f32 %v659_v62, 0.0  ;;  %v1456_v63 = vpop.f32.mrb[30].mxu1 }
 0x1ce   :  { %v674_v1 = vadd.f32 %v1456_v63, %v1854_v21  ;;  %v668_v3 = vpop.f32.mrb[31].mxu1 }
 0x1cf   :  { %v669_v4 = vadd.f32 %v1854_v21, %v668_v3  ;;  %1507 = vmatprep.mubr.msk.f32.mxu0 %vm800_vm2, %v769_v58 }
 0x1d0   :  { %1508 = vmatmul.mubr.msk.f32.gmra.mrb[28].mxu0 %vm800_vm2, %v770_v0  ;;  %v772_v6 = vmax.f32 %v674_v1, 0.0 }
 0x1d1   :  { %v771_v2 = vmax.f32 %v669_v4, 0.0  ;;  %v1459_v5 = vpop.f32.mrb[32].mxu1 }
 0x1d2   :  { %v684_v7 = vadd.f32 %v1459_v5, %v1854_v21  ;;  %v678_v8 = vpop.f32.mrb[33].mxu1 }
 0x1d3   :  { %v679_v9 = vadd.f32 %v1854_v21, %v678_v8  ;;  %1510 = vmatprep.mubr.msk.f32.mxu0 %vm800_vm2, %v771_v2 }
 0x1d4   :  { %1511 = vmatmul.mubr.msk.f32.gmra.mrb[30].mxu0 %vm800_vm2, %v772_v6  ;;  %v774_v12 = vmax.f32 %v684_v7, 0.0 }
 0x1d5   :  { %v773_v10 = vmax.f32 %v679_v9, 0.0  ;;  %v1462_v11 = vpop.f32.mrb[34].mxu1 }
 0x1d6   :  { %v694_v13 = vadd.f32 %v1462_v11, %v1854_v21  ;;  %v688_v14 = vpop.f32.mrb[35].mxu1 }
 0x1d7   :  { %v689_v15 = vadd.f32 %v1854_v21, %v688_v14  ;;  %1513 = vmatprep.mubr.msk.f32.mxu0 %vm800_vm2, %v773_v10 }
 0x1d8   :  { %1514 = vmatmul.mubr.msk.f32.gmra.mrb[32].mxu0 %vm800_vm2, %v774_v12  ;;  %v776_v18 = vmax.f32 %v694_v13, 0.0 }
 0x1d9   :  { %v775_v16 = vmax.f32 %v689_v15, 0.0  ;;  %v1465_v17 = vpop.f32.mrb[36].mxu1 }
 0x1da   :  { %v704_v19 = vadd.f32 %v1465_v17, %v1854_v21  ;;  %v698_v20 = vpop.f32.mrb[37].mxu1 }
 0x1db   :  { %v699_v22 = vadd.f32 %v1854_v21, %v698_v20  ;;  %1516 = vmatprep.mubr.msk.f32.mxu0 %vm800_vm2, %v775_v16 }
 0x1dc   :  { %1517 = vmatmul.mubr.msk.f32.gmra.mrb[34].mxu0 %vm800_vm2, %v776_v18  ;;  %v778_v25 = vmax.f32 %v704_v19, 0.0 }
 0x1dd   :  { %v777_v23 = vmax.f32 %v699_v22, 0.0  ;;  %v1468_v24 = vpop.f32.mrb[38].mxu1 }
 0x1de   :  { %v714_v51 = vadd.f32 %v1468_v24, %v1854_v21  ;;  %v708_v26 = vpop.f32.mrb[39].mxu1 }
 0x1df   :  { %v709_v27 = vadd.f32 %v1854_v21, %v708_v26  ;;  %1519 = vmatprep.mubr.msk.f32.mxu0 %vm800_vm2, %v777_v23 }
 0x1e0   :  { %1520 = vmatmul.mubr.msk.f32.gmra.mrb[36].mxu0 %vm800_vm2, %v778_v25  ;;  %v780_v30 = vmax.f32 %v714_v51, 0.0 }
 0x1e1   :  { %v779_v28 = vmax.f32 %v709_v27, 0.0  ;;  %v1471_v29 = vpop.f32.mrb[40].mxu1 }
 0x1e2   :  { %v724_v31 = vadd.f32 %v1471_v29, %v1854_v21  ;;  %v718_v32 = vpop.f32.mrb[41].mxu1 }
 0x1e3   :  { %v719_v33 = vadd.f32 %v1854_v21, %v718_v32  ;;  %1522 = vmatprep.mubr.msk.f32.mxu0 %vm800_vm2, %v779_v28 }
 0x1e4   :  { %1523 = vmatmul.mubr.msk.f32.gmra.mrb[38].mxu0 %vm800_vm2, %v780_v30  ;;  %v782_v36 = vmax.f32 %v724_v31, 0.0 }
 0x1e5   :  { %v781_v34 = vmax.f32 %v719_v33, 0.0  ;;  %v1474_v35 = vpop.f32.mrb[42].mxu1 }
 0x1e6   :  { %v734_v37 = vadd.f32 %v1474_v35, %v1854_v21  ;;  %v728_v38 = vpop.f32.mrb[43].mxu1 }
 0x1e7   :  { %v729_v39 = vadd.f32 %v1854_v21, %v728_v38  ;;  %1525 = vmatprep.mubr.msk.f32.mxu0 %vm800_vm2, %v781_v34 }
 0x1e8   :  { %1526 = vmatmul.mubr.msk.f32.gmra.mrb[40].mxu0 %vm800_vm2, %v782_v36  ;;  %v784_v42 = vmax.f32 %v734_v37, 0.0 }
 0x1e9   :  { %v783_v40 = vmax.f32 %v729_v39, 0.0  ;;  %v1477_v41 = vpop.f32.mrb[44].mxu1 }
 0x1ea   :  { %v744_v43 = vadd.f32 %v1477_v41, %v1854_v21  ;;  %v738_v44 = vpop.f32.mrb[45].mxu1 }
 0x1eb   :  { %v739_v45 = vadd.f32 %v1854_v21, %v738_v44  ;;  %1528 = vmatprep.mubr.msk.f32.mxu0 %vm800_vm2, %v783_v40 }
 0x1ec   :  { %1529 = vmatmul.mubr.msk.f32.gmra.mrb[42].mxu0 %vm800_vm2, %v784_v42  ;;  %v786_v48 = vmax.f32 %v744_v43, 0.0 }
 0x1ed   :  { %v785_v46 = vmax.f32 %v739_v45, 0.0  ;;  %v1480_v47 = vpop.f32.mrb[46].mxu1 }
 0x1ee   :  { %v754_v49 = vadd.f32 %v1480_v47, %v1854_v21  ;;  %v748_v50 = vpop.f32.mrb[47].mxu1 }
 0x1ef   :  { %v749_v52 = vadd.f32 %v1854_v21, %v748_v50  ;;  %1531 = vmatprep.mubr.msk.f32.mxu0 %vm800_vm2, %v785_v46 }
 0x1f0   :  { %1532 = vmatmul.mubr.msk.f32.gmra.mrb[44].mxu0 %vm800_vm2, %v786_v48  ;;  %v788_v54 = vmax.f32 %v754_v49, 0.0 }
 0x1f1   :  { %v787_v53 = vmax.f32 %v749_v52, 0.0 }
 0x1f3   :  { %1534 = vmatprep.mubr.msk.f32.mxu0 %vm800_vm2, %v787_v53 }
 0x1f4   :  { %1535 = vmatmul.mubr.msk.f32.gmra.mrb[46].mxu0 %vm800_vm2, %v788_v54 }
 0x28b   :  { %v1491_v56 = vpop.f32.mrb[16].mxu0 }
 0x28c   :  { %v969_v57 = vadd.f32 %v1491_v56, %v1923_v55  ;;  %v963_v21 = vpop.f32.mrb[17].mxu0 }
 0x28d   :  { %v964_v59 = vadd.f32 %v1923_v55, %v963_v21 }
 0x28e   :  { %1124 = vst.msk [vmem:[%s2092_s7 + $0x8] sm:$0xff] %vm1122_vm3, %v969_v57 }
 0x28f   :  { %1123 = vst.msk [vmem:[%s2092_s7] sm:$0xff] %vm1122_vm3, %v964_v59  ;;  %v1494_v60 = vpop.f32.mrb[18].mxu0 }
 0x290   :  { %v979_v61 = vadd.f32 %v1494_v60, %v1923_v55  ;;  %v973_v62 = vpop.f32.mrb[19].mxu0 }
 0x291   :  { %v974_v58 = vadd.f32 %v1923_v55, %v973_v62 }
 0x292   :  { %1126 = vst.msk [vmem:[%s2092_s7 + $0x18] sm:$0xff] %vm1122_vm3, %v979_v61 }
 0x293   :  { %1125 = vst.msk [vmem:[%s2092_s7 + $0x10] sm:$0xff] %vm1122_vm3, %v974_v58  ;;  %v1497_v63 = vpop.f32.mrb[20].mxu0 }
 0x294   :  { %v989_v0 = vadd.f32 %v1497_v63, %v1923_v55  ;;  %v983_v1 = vpop.f32.mrb[21].mxu0 }
 0x295   :  { %v984_v3 = vadd.f32 %v1923_v55, %v983_v1 }
 0x296   :  { %1128 = vst.msk [vmem:[%s2092_s7 + $0x28] sm:$0xff] %vm1122_vm3, %v989_v0 }
 0x297   :  { %1127 = vst.msk [vmem:[%s2092_s7 + $0x20] sm:$0xff] %vm1122_vm3, %v984_v3  ;;  %v1500_v4 = vpop.f32.mrb[22].mxu0 }
 0x298   :  { %v999_v2 = vadd.f32 %v1500_v4, %v1923_v55  ;;  %v993_v5 = vpop.f32.mrb[23].mxu0 }
 0x299   :  { %v994_v6 = vadd.f32 %v1923_v55, %v993_v5 }
 0x29a   :  { %1130 = vst.msk [vmem:[%s2092_s7 + $0x38] sm:$0xff] %vm1122_vm3, %v999_v2 }
 0x29b   :  { %1129 = vst.msk [vmem:[%s2092_s7 + $0x30] sm:$0xff] %vm1122_vm3, %v994_v6  ;;  %v1503_v7 = vpop.f32.mrb[24].mxu0 }
 0x29c   :  { %v1009_v8 = vadd.f32 %v1503_v7, %v1923_v55  ;;  %v1003_v9 = vpop.f32.mrb[25].mxu0 }
 0x29d   :  { %v1004_v10 = vadd.f32 %v1923_v55, %v1003_v9 }
 0x29e   :  { %1132 = vst.msk [vmem:[%s2092_s7 + $0x48] sm:$0xff] %vm1122_vm3, %v1009_v8 }
 0x29f   :  { %1131 = vst.msk [vmem:[%s2092_s7 + $0x40] sm:$0xff] %vm1122_vm3, %v1004_v10  ;;  %v1506_v11 = vpop.f32.mrb[26].mxu0 }
 0x2a0   :  { %v1019_v12 = vadd.f32 %v1506_v11, %v1923_v55  ;;  %v1013_v13 = vpop.f32.mrb[27].mxu0 }
 0x2a1   :  { %v1014_v14 = vadd.f32 %v1923_v55, %v1013_v13 }
 0x2a2   :  { %1134 = vst.msk [vmem:[%s2092_s7 + $0x58] sm:$0xff] %vm1122_vm3, %v1019_v12 }
 0x2a3   :  { %1133 = vst.msk [vmem:[%s2092_s7 + $0x50] sm:$0xff] %vm1122_vm3, %v1014_v14  ;;  %v1509_v15 = vpop.f32.mrb[28].mxu0 }
 0x2a4   :  { %v1029_v16 = vadd.f32 %v1509_v15, %v1923_v55  ;;  %v1023_v17 = vpop.f32.mrb[29].mxu0 }
 0x2a5   :  { %v1024_v18 = vadd.f32 %v1923_v55, %v1023_v17 }
 0x2a6   :  { %1136 = vst.msk [vmem:[%s2092_s7 + $0x68] sm:$0xff] %vm1122_vm3, %v1029_v16 }
 0x2a7   :  { %1135 = vst.msk [vmem:[%s2092_s7 + $0x60] sm:$0xff] %vm1122_vm3, %v1024_v18  ;;  %v1512_v19 = vpop.f32.mrb[30].mxu0 }
 0x2a8   :  { %v1039_v20 = vadd.f32 %v1512_v19, %v1923_v55  ;;  %v1033_v22 = vpop.f32.mrb[31].mxu0 }
 0x2a9   :  { %v1034_v23 = vadd.f32 %v1923_v55, %v1033_v22 }
 0x2aa   :  { %1138 = vst.msk [vmem:[%s2092_s7 + $0x78] sm:$0xff] %vm1122_vm3, %v1039_v20 }
 0x2ab   :  { %1137 = vst.msk [vmem:[%s2092_s7 + $0x70] sm:$0xff] %vm1122_vm3, %v1034_v23  ;;  %v1515_v24 = vpop.f32.mrb[32].mxu0 }
 0x2ac   :  { %v1049_v25 = vadd.f32 %v1515_v24, %v1923_v55  ;;  %v1043_v51 = vpop.f32.mrb[33].mxu0 }
 0x2ad   :  { %v1044_v26 = vadd.f32 %v1923_v55, %v1043_v51 }
 0x2ae   :  { %1140 = vst.msk [vmem:[%s2092_s7 + $0x88] sm:$0xff] %vm1122_vm3, %v1049_v25 }
 0x2af   :  { %1139 = vst.msk [vmem:[%s2092_s7 + $0x80] sm:$0xff] %vm1122_vm3, %v1044_v26  ;;  %v1518_v27 = vpop.f32.mrb[34].mxu0 }
 0x2b0   :  { %v1059_v28 = vadd.f32 %v1518_v27, %v1923_v55  ;;  %v1053_v29 = vpop.f32.mrb[35].mxu0 }
 0x2b1   :  { %v1054_v30 = vadd.f32 %v1923_v55, %v1053_v29 }
 0x2b2   :  { %1142 = vst.msk [vmem:[%s2092_s7 + $0x98] sm:$0xff] %vm1122_vm3, %v1059_v28 }
 0x2b3   :  { %1141 = vst.msk [vmem:[%s2092_s7 + $0x90] sm:$0xff] %vm1122_vm3, %v1054_v30  ;;  %v1521_v31 = vpop.f32.mrb[36].mxu0 }
 0x2b4   :  { %v1069_v32 = vadd.f32 %v1521_v31, %v1923_v55  ;;  %v1063_v33 = vpop.f32.mrb[37].mxu0 }
 0x2b5   :  { %v1064_v34 = vadd.f32 %v1923_v55, %v1063_v33 }
 0x2b6   :  { %1144 = vst.msk [vmem:[%s2092_s7 + $0xa8] sm:$0xff] %vm1122_vm3, %v1069_v32 }
 0x2b7   :  { %1143 = vst.msk [vmem:[%s2092_s7 + $0xa0] sm:$0xff] %vm1122_vm3, %v1064_v34  ;;  %v1524_v35 = vpop.f32.mrb[38].mxu0 }
 0x2b8   :  { %v1079_v36 = vadd.f32 %v1524_v35, %v1923_v55  ;;  %v1073_v37 = vpop.f32.mrb[39].mxu0 }
 0x2b9   :  { %v1074_v38 = vadd.f32 %v1923_v55, %v1073_v37 }
 0x2ba   :  { %1146 = vst.msk [vmem:[%s2092_s7 + $0xb8] sm:$0xff] %vm1122_vm3, %v1079_v36 }
 0x2bb   :  { %1145 = vst.msk [vmem:[%s2092_s7 + $0xb0] sm:$0xff] %vm1122_vm3, %v1074_v38  ;;  %v1527_v39 = vpop.f32.mrb[40].mxu0 }
 0x2bc   :  { %v1089_v40 = vadd.f32 %v1527_v39, %v1923_v55  ;;  %v1083_v41 = vpop.f32.mrb[41].mxu0 }
 0x2bd   :  { %v1084_v42 = vadd.f32 %v1923_v55, %v1083_v41 }
 0x2be   :  { %1148 = vst.msk [vmem:[%s2092_s7 + $0xc8] sm:$0xff] %vm1122_vm3, %v1089_v40 }
 0x2bf   :  { %1147 = vst.msk [vmem:[%s2092_s7 + $0xc0] sm:$0xff] %vm1122_vm3, %v1084_v42  ;;  %v1530_v43 = vpop.f32.mrb[42].mxu0 }
 0x2c0   :  { %v1099_v44 = vadd.f32 %v1530_v43, %v1923_v55  ;;  %v1093_v45 = vpop.f32.mrb[43].mxu0 }
 0x2c1   :  { %v1094_v46 = vadd.f32 %v1923_v55, %v1093_v45 }
 0x2c2   :  { %1150 = vst.msk [vmem:[%s2092_s7 + $0xd8] sm:$0xff] %vm1122_vm3, %v1099_v44 }
 0x2c3   :  { %1149 = vst.msk [vmem:[%s2092_s7 + $0xd0] sm:$0xff] %vm1122_vm3, %v1094_v46  ;;  %v1533_v47 = vpop.f32.mrb[44].mxu0 }
 0x2c4   :  { %v1109_v48 = vadd.f32 %v1533_v47, %v1923_v55  ;;  %v1103_v49 = vpop.f32.mrb[45].mxu0 }
 0x2c5   :  { %v1104_v50 = vadd.f32 %v1923_v55, %v1103_v49 }
 0x2c6   :  { %1152 = vst.msk [vmem:[%s2092_s7 + $0xe8] sm:$0xff] %vm1122_vm3, %v1109_v48 }
 0x2c7   :  { %1151 = vst.msk [vmem:[%s2092_s7 + $0xe0] sm:$0xff] %vm1122_vm3, %v1104_v50  ;;  %v1536_v52 = vpop.f32.mrb[46].mxu0 }
 0x2c8   :  { %v1119_v53 = vadd.f32 %v1536_v52, %v1923_v55  ;;  %v1113_v54 = vpop.f32.mrb[47].mxu0 }
 0x2c9   :  { %v1114_v56 = vadd.f32 %v1923_v55, %v1113_v54 }
 0x2ca   :  { %1154 = vst.msk [vmem:[%s2092_s7 + $0xf8] sm:$0xff] %vm1122_vm3, %v1119_v53 }
 0x2cb   :  { %1153 = vst.msk [vmem:[%s2092_s7 + $0xf0] sm:$0xff] %vm1122_vm3, %v1114_v56 }

</bundles_post_ra>
